<compile_context>
chip_gen: v5e
topology: v5e:2x2
jax: 0.10.0
libtpu: 0.0.40
codegen_flags: <defaults>
</compile_context>

<pallas_src>
import jax
import jax.numpy as jnp
from jax.experimental import pallas as pl
from jax.experimental.pallas import tpu as pltpu


def _scale_shift_kernel(x_ref, o_ref):
    # Elementwise hot path on the VPU over the whole lane-dense tile.
    o_ref[...] = (x_ref[...] * 2 + 1).astype(o_ref.dtype)


def _choose_tiling(n_elems):
    """Pick (lane, tile_rows, padded_rows) for a flattened tensor of n_elems."""
    # Lane width: wide (512) for big tensors, 128 (still fully lane-dense)
    # for tiny ones to avoid needless padding.
    lane = 512 if n_elems >= 512 * 8 else 128
    rows = -(-n_elems // lane)  # cdiv
    # Tile rows: multiple of 8 (sublane), capped so one f32 buffer is ~2 MiB
    # (1024 x 512 x 4B). With double-buffered input + output that is ~8 MiB
    # live, safely inside scoped VMEM on v5e (16 MiB) / v6e / v7x (32 MiB).
    tile_rows = min(1024, rows)
    tile_rows = max(8, ((tile_rows + 7) // 8) * 8)
    padded_rows = -(-rows // tile_rows) * tile_rows
    return lane, tile_rows, padded_rows


def pt_module_forward(x):
    """x: (B, C, H, W) -> (B, C, H, W), y = x * 2 + 1 (elementwise)."""
    orig_shape = x.shape
    flat = x.reshape(-1)
    n = flat.shape[0]

    lane, tile_rows, padded_rows = _choose_tiling(n)
    padded_n = padded_rows * lane
    if padded_n != n:
        # Padding values are irrelevant (affine op); sliced off afterwards.
        flat = jnp.pad(flat, (0, padded_n - n))
    x2d = flat.reshape(padded_rows, lane)

    grid = (padded_rows // tile_rows,)

    out2d = pl.pallas_call(
        _scale_shift_kernel,
        out_shape=jax.ShapeDtypeStruct((padded_rows, lane), x.dtype),
        grid_spec=pl.GridSpec(
            grid=grid,
            in_specs=[pl.BlockSpec((tile_rows, lane), lambda r: (r, 0))],
            out_specs=pl.BlockSpec((tile_rows, lane), lambda r: (r, 0)),
        ),
        compiler_params=pltpu.CompilerParams(
            dimension_semantics=("parallel",),
        ),
    )(x2d)

    out = out2d.reshape(-1)
    if padded_n != n:
        out = out[:n]
    return out.reshape(orig_shape)


if __name__ == "__main__":
    key = jax.random.PRNGKey(0)
    B, C, H, W = 2, 4, 16, 16
    x = jax.random.normal(key, (B, C, H, W), dtype=jnp.float32)

    y = pt_module_forward(x)
    y = jax.block_until_ready(y)

    # Reference (mirrors the PyTorch per-batch loop + stack semantics).
    y_ref = x * 2.0 + 1.0
    assert y.shape == x.shape
    assert jnp.allclose(y, y_ref, atol=1e-6), "mismatch vs reference"

    print("KERNEL_OK")
</pallas_src>

<mosaic_0001>
module attributes {stable_mosaic.version = 11 : i64} {
  func.func @_scale_shift_kernel(%arg0: i32, %arg1: memref<16x128xf32, #tpu.memory_space<vmem>>, %arg2: memref<16x128xf32, #tpu.memory_space<vmem>>) attributes {dimension_semantics = [#tpu.dimension_semantics<parallel>], iteration_bounds = array<i64: 1>, scalar_prefetch = 0 : i64, scratch_operands = 0 : i64, tpu.core_type = #tpu.core_type<tc>, window_params = [{transform_indices = @transform_0, window_bounds = array<i64: 16, 128>}, {transform_indices = @transform_1, window_bounds = array<i64: 16, 128>}]} {
    %c0 = arith.constant 0 : index
    %c0_0 = arith.constant 0 : index
    %0 = vector.load %arg1[%c0, %c0_0] : memref<16x128xf32, #tpu.memory_space<vmem>>, vector<16x128xf32>
    %cst = arith.constant 2.000000e+00 : f32
    %1 = vector.broadcast %cst : f32 to vector<16x128xf32>
    %2 = arith.mulf %0, %1 : vector<16x128xf32>
    %cst_1 = arith.constant 1.000000e+00 : f32
    %3 = vector.broadcast %cst_1 : f32 to vector<16x128xf32>
    %4 = arith.addf %2, %3 : vector<16x128xf32>
    %c0_2 = arith.constant 0 : index
    %c0_3 = arith.constant 0 : index
    %5 = vector.load %arg2[%c0_2, %c0_3] : memref<16x128xf32, #tpu.memory_space<vmem>>, vector<16x128xf32>
    tpu.vector_store %arg2[%c0_2, %c0_3], %4 {strides = array<i32>} : memref<16x128xf32, #tpu.memory_space<vmem>>, vector<16x128xf32>,
    return
  }
  func.func @transform_0(%arg0: i32) -> (i32, i32) {
    %c0_i32 = arith.constant 0 : i32
    %c0_i32_0 = arith.constant 0 : i32
    return %arg0, %c0_i32 : i32, i32
  }
  func.func @transform_1(%arg0: i32) -> (i32, i32) {
    %c0_i32 = arith.constant 0 : i32
    %c0_i32_0 = arith.constant 0 : i32
    return %arg0, %c0_i32 : i32, i32
  }
}

</mosaic_0001>

<bundles_post_ra>
// kernel: tpu_custom_call.1
= control target key start
LH: loop header
LB: loop body
LE: loop exit
PB: predicated region body
PF: predicated region fallthrough
CT: control target
= control target key end

     0   :  { %6 = vsyncpa [#allocation3], 0  ;;  %s128_s0 = inlined_call_operand.hbm [shape: f32[16,128], index: 0, kind: input, shape index: {}]   ;;  %s129_s1 = inlined_call_operand.hbm [shape: f32[16,128], index: 1, kind: output, shape index: {}]  }
   0x1   :  { %7 = vsyncpa [#allocation4], 0  ;;  %s12_s8 = sshll.u32 %s128_s0, 4  ;;  %s108_s9 = smov [#allocation2]   ;;  %s13_s8 = int_to_ptr.hbm [resolvable:$true] %s12_s8 }
   0x2   :  { %s14_s10 = sshll.u32 %s108_s9, 4  ;;  %s109_s11 = smov 128   ;;  %s15_s10 = int_to_ptr.vmem [resolvable:$true] %s14_s10 }
   0x3   :  { %s110_s12 = smov 8  }
   0x4   :  { %20 = dma.hbm_to_vmem [thread:$0]  %s13_s8, 256, %s15_s10, [#allocation3], %s109_s11, %s109_s11, %s110_s12  }
   0x5   :  { %104 = dma.done.wait [#allocation3], 256  }
   0x6   :  { %105 = vsyncadd [#allocation3], 4294967040  ;;  %v25_v0 = vld [vmem:[#allocation2] sm:$0xff]  ;;  %v26_v1 = vld [vmem:[#allocation2 + $0x8] sm:$0xff]  ;;  %s111_s13 = smov [#allocation5]   ;;  %s39_s17 = sshll.u32 %s129_s1, 4  ;;  %s40_s17 = int_to_ptr.hbm [resolvable:$true] %s39_s17 }
   0x7   :  { %v27_v2 = vmul.f32 2.0, %v25_v0  ;;  %v28_v3 = vmul.f32 2.0, %v26_v1  ;;  %s37_s14 = sshll.u32 %s111_s13, 4  ;;  %s38_s14 = int_to_ptr.vmem [resolvable:$true] %s37_s14 }
   0x9   :  { %v29_v4 = vadd.f32 1.0, %v27_v2  ;;  %v30_v5 = vadd.f32 1.0, %v28_v3 }
   0xb   :  { %31 = vst [vmem:[#allocation5] sm:$0xff] %v29_v4 }
   0xc   :  { %32 = vst [vmem:[#allocation5 + $0x8] sm:$0xff] %v30_v5 }
   0xd   :  { %45 = dma.vmem_to_hbm [thread:$0]  %s38_s14, 256, %s40_s17, [#allocation4], %s109_s11, %s109_s11, %s110_s12  }
   0xe   :  { %106 = dma.done.wait [#allocation4], 256  }
   0xf   :  { %107 = vsyncadd [#allocation4], 4294967040 }
  0x10   :  { %50 = vsyncpa [#allocation3], 1 }
  0x11   :  { %51 = vsyncpa [#allocation4], 1 }

</bundles_post_ra>
